<compile_context>
chip_gen: v7x
topology: tpu7x:2x2x1
jax: 0.10.0
libtpu: 0.0.40
codegen_flags: <defaults>
</compile_context>

<pallas_src>
import functools

import jax
import jax.numpy as jnp
from jax.experimental import pallas as pl
from jax.experimental.pallas import tpu as pltpu


def _up_kernel(xlo_ref, xhi_ref, w_ref, b_ref, o_ref, p_ref, *, width):
    # xlo_ref: (1, Cin, L)    x[r, c]   flattened row-major, L = TH * width
    # xhi_ref: (1, Cin, L)    x[r+1, c] (bottom row zero-padded), same flattening
    # w_ref:   (4*Cout, 4*Cin) polyphase weight
    # b_ref:   (4*Cout, 1)     bias (f32), tiled over the 4 parities
    # o_ref:   (1, 4*Cout, L)  output: row p*Cout+o (p = 2*dr+dc), col r*width+c
    # p_ref:   VMEM scratch (4*Cin, L): 4-tap patch matrix (contraction axis)
    cin = xlo_ref.shape[1]
    length = xlo_ref.shape[2]

    xlo = xlo_ref[0]                                   # (Cin, L) bf16
    xhi = xhi_ref[0]

    # Columns that are the first pixel of an image row. After the 1-left shift below they land
    # on the right boundary tap x[r, W], which must read the (implicit) zero padding.
    col = jax.lax.broadcasted_iota(jnp.int32, (cin, length), 1)
    row_start = (col % width) == 0
    zeros = jnp.zeros_like(xlo)
    xlo_m = jnp.where(row_start, zeros, xlo)
    xhi_m = jnp.where(row_start, zeros, xhi)

    # Assemble P: rows [0C,1C)=x[r,c], [1C,2C)=x[r,c+1], [2C,3C)=x[r+1,c], [3C,4C)=x[r+1,c+1]
    p_ref[0 * cin:1 * cin, :] = xlo
    p_ref[2 * cin:3 * cin, :] = xhi
    p_ref[1 * cin:2 * cin, 0:length - 1] = xlo_m[:, 1:]
    p_ref[3 * cin:4 * cin, 0:length - 1] = xhi_m[:, 1:]
    p_ref[1 * cin:2 * cin, length - 1:length] = zeros[:, 0:1]
    p_ref[3 * cin:4 * cin, length - 1:length] = zeros[:, 0:1]

    # One MXU pass (bf16 x bf16 -> f32), then bias + ReLU on the VPU, dense f32 store.
    acc = jnp.dot(w_ref[...], p_ref[...], preferred_element_type=jnp.float32)
    acc = jnp.maximum(acc + b_ref[...], 0.0)
    o_ref[0] = acc.astype(o_ref.dtype)


def _pick_row_tile(h, w):
    """Rows per grid step. The flattened tile length TH*w must be a multiple of 128 (lane
    alignment) unless TH == h (block equals the full array dims)."""
    cands = [t for t in range(1, h) if h % t == 0 and (t * w) % 128 == 0]
    if not cands:
        return h
    good = [t for t in cands if 512 <= t * w <= 4096]
    if good:
        return good[0]
    small = [t for t in cands if t * w <= 4096]
    return small[-1] if small else cands[0]


def up_forward(x_nchw, w_t, bias, *, compute_dtype=jnp.bfloat16):
    """ConvTranspose2d(in_ch, out_ch, k=3, s=2, p=1, output_padding=1) + ReLU.

    x_nchw: (N, Cin, H, W) float32
    w_t:    (Cin, Cout, 3, 3) float32   (PyTorch ConvTranspose2d weight layout)
    bias:   (Cout,) float32
    returns (N, Cout, 2H, 2W) float32
    """
    n, cin, h, w = x_nchw.shape
    cout = w_t.shape[1]
    th = _pick_row_tile(h, w)
    length = th * w

    # ---- glue (plain JAX): no input transpose, no dilated array ----
    x_c = x_nchw.astype(compute_dtype)
    x_lo = x_c.reshape(n, cin, h * w)                                    # x[r, c]
    x_hi = jnp.concatenate(                                              # x[r+1, c], zero bottom row
        [x_c[:, :, 1:, :], jnp.zeros((n, cin, 1, w), compute_dtype)],
        axis=2).reshape(n, cin, h * w)

    # Polyphase weight: block (parity p = 2*dr+dc, tap t) is w_t[:, :, kh, kw].T
    def blk(kh, kw):
        return w_t[:, :, kh, kw].T                                       # (Cout, Cin)

    z = jnp.zeros((cout, cin), w_t.dtype)
    w_big = jnp.block([
        [blk(1, 1), z,         z,         z],                            # (2r  , 2c  )
        [blk(1, 2), blk(1, 0), z,         z],                            # (2r  , 2c+1)
        [blk(2, 1), z,         blk(0, 1), z],                            # (2r+1, 2c  )
        [blk(2, 2), blk(2, 0), blk(0, 2), blk(0, 0)],                    # (2r+1, 2c+1)
    ]).astype(compute_dtype)                                             # (4*Cout, 4*Cin)
    b4 = jnp.tile(bias, 4).reshape(4 * cout, 1).astype(jnp.float32)

    kernel = functools.partial(_up_kernel, width=w)
    out = pl.pallas_call(
        kernel,
        out_shape=jax.ShapeDtypeStruct((n, 4 * cout, h * w), jnp.float32),
        grid_spec=pltpu.PrefetchScalarGridSpec(
            num_scalar_prefetch=0,
            grid=(n, h // th),
            in_specs=[
                pl.BlockSpec((1, cin, length), lambda b, i: (b, 0, i)),
                pl.BlockSpec((1, cin, length), lambda b, i: (b, 0, i)),
                pl.BlockSpec((4 * cout, 4 * cin), lambda b, i: (0, 0)),
                pl.BlockSpec((4 * cout, 1), lambda b, i: (0, 0)),
            ],
            out_specs=pl.BlockSpec((1, 4 * cout, length), lambda b, i: (b, 0, i)),
            scratch_shapes=[pltpu.VMEM((4 * cin, length), compute_dtype)],
        ),
        compiler_params=pltpu.CompilerParams(
            dimension_semantics=("parallel", "parallel")),
    )(x_lo, x_hi, w_big, b4)

    # Interleave the 4 parities back to NCHW:
    #   out[n, (2*dr+dc)*Cout + o, r*W + c] -> y[n, o, 2r+dr, 2c+dc]
    # TODO(synk): this interleave could be fused into the kernel with strided stores to save
    # one output-sized HBM round trip.
    y = out.reshape(n, 2, 2, cout, h, w)
    y = jnp.transpose(y, (0, 3, 4, 1, 5, 2)).reshape(n, cout, 2 * h, 2 * w)
    return y


def _reference(x_nchw, w_t, bias):
    # Pure-JAX reference of the transposed conv (via lhs dilation) + ReLU, in f32.
    w_oihw = jnp.transpose(jnp.flip(w_t, axis=(2, 3)), (1, 0, 2, 3))
    y = jax.lax.conv_general_dilated(
        x_nchw, w_oihw, window_strides=(1, 1),
        padding=((1, 2), (1, 2)), lhs_dilation=(2, 2),
        dimension_numbers=("NCHW", "OIHW", "NCHW"))
    return jnp.maximum(y + bias[None, :, None, None], 0.0)


if __name__ == "__main__":
    in_ch, out_ch = 4, 8
    N, H, W = 2, 16, 16
    use_bias = True  # module arg; bias zeros if False

    key = jax.random.PRNGKey(0)
    kx, kw, kb = jax.random.split(key, 3)
    x = jax.random.normal(kx, (N, in_ch, H, W), dtype=jnp.float32)
    w_t = 0.1 * jax.random.normal(kw, (in_ch, out_ch, 3, 3), dtype=jnp.float32)
    b = (0.1 * jax.random.normal(kb, (out_ch,), dtype=jnp.float32)
         if use_bias else jnp.zeros((out_ch,), jnp.float32))

    out = jax.block_until_ready(up_forward(x, w_t, b))

    ref = _reference(x, w_t, b)
    assert out.shape == (N, out_ch, 2 * H, 2 * W)
    # bf16 activations/weights into the MXU (f32 accumulation) -> loosened tolerance.
    assert bool(jnp.allclose(out, ref, rtol=2e-2, atol=2e-2))

    print("KERNEL_OK")
</pallas_src>

<mosaic_0001>
module attributes {stable_mosaic.version = 11 : i64} {
  func.func @_up_kernel(%arg0: i32, %arg1: i32, %arg2: memref<1x4x128xbf16, #tpu.memory_space<vmem>>, %arg3: memref<1x4x128xbf16, #tpu.memory_space<vmem>>, %arg4: memref<32x16xbf16, #tpu.memory_space<vmem>>, %arg5: memref<32x1xf32, #tpu.memory_space<vmem>>, %arg6: memref<1x32x128xf32, #tpu.memory_space<vmem>>, %arg7: memref<16x128xbf16, #tpu.memory_space<vmem>>) attributes {dimension_semantics = [#tpu.dimension_semantics<parallel>, #tpu.dimension_semantics<parallel>], iteration_bounds = array<i64: 2, 2>, scalar_prefetch = 0 : i64, scratch_operands = 1 : i64, tpu.core_type = #tpu.core_type<tc>, window_params = [{transform_indices = @transform_0, window_bounds = array<i64: 1, 4, 128>}, {transform_indices = @transform_1, window_bounds = array<i64: 1, 4, 128>}, {pipeline_mode = #tpu.pipeline_mode<synchronous>, transform_indices = @transform_2, window_bounds = array<i64: 32, 16>}, {pipeline_mode = #tpu.pipeline_mode<synchronous>, transform_indices = @transform_3, window_bounds = array<i64: 32, 1>}, {transform_indices = @transform_4, window_bounds = array<i64: 1, 32, 128>}]} {
    %c0 = arith.constant 0 : index
    %c0_0 = arith.constant 0 : index
    %c0_1 = arith.constant 0 : index
    %0 = vector.load %arg2[%c0, %c0_0, %c0_1] : memref<1x4x128xbf16, #tpu.memory_space<vmem>>, vector<1x4x128xbf16>
    %1 = vector.shape_cast %0 : vector<1x4x128xbf16> to vector<4x128xbf16>
    %c0_2 = arith.constant 0 : index
    %c0_3 = arith.constant 0 : index
    %c0_4 = arith.constant 0 : index
    %2 = vector.load %arg3[%c0_2, %c0_3, %c0_4] : memref<1x4x128xbf16, #tpu.memory_space<vmem>>, vector<1x4x128xbf16>
    %3 = vector.shape_cast %2 : vector<1x4x128xbf16> to vector<4x128xbf16>
    %4 = tpu.iota {dimensions = array<i32: 1>} : vector<4x128xi32>
    %c16_i32 = arith.constant 16 : i32
    %c0_i32 = arith.constant 0 : i32
    %5 = arith.cmpi eq, %c16_i32, %c0_i32 : i32
    %c1_i32 = arith.constant 1 : i32
    %6 = arith.select %5, %c1_i32, %c16_i32 : i32
    %7 = vector.broadcast %6 : i32 to vector<4x128xi32>
    %8 = arith.remsi %4, %7 : vector<4x128xi32>
    %c0_i32_5 = arith.constant 0 : i32
    %9 = vector.broadcast %c0_i32_5 : i32 to vector<4x128xi32>
    %10 = arith.cmpi ne, %8, %9 : vector<4x128xi32>
    %c0_i32_6 = arith.constant 0 : i32
    %11 = vector.broadcast %c0_i32_6 : i32 to vector<4x128xi32>
    %12 = arith.cmpi slt, %8, %11 : vector<4x128xi32>
    %c0_i32_7 = arith.constant 0 : i32
    %13 = arith.cmpi slt, %6, %c0_i32_7 : i32
    %14 = vector.broadcast %13 : i1 to vector<4x128xi1>
    %15 = vector.broadcast %14 : vector<4x128xi1> to vector<4x128xi1>
    %16 = arith.xori %12, %15 : vector<4x128xi1>
    %17 = arith.andi %16, %10 : vector<4x128xi1>
    %18 = vector.broadcast %6 : i32 to vector<4x128xi32>
    %19 = arith.addi %8, %18 : vector<4x128xi32>
    %20 = arith.select %17, %19, %8 : vector<4x128xi1>, vector<4x128xi32>
    %c0_i32_8 = arith.constant 0 : i32
    %21 = vector.broadcast %c0_i32_8 : i32 to vector<4x128xi32>
    %22 = arith.cmpi eq, %20, %21 : vector<4x128xi32>
    %cst = arith.constant 0.000000e+00 : bf16
    %23 = vector.broadcast %cst : bf16 to vector<4x128xbf16>
    %24 = arith.select %22, %23, %1 : vector<4x128xi1>, vector<4x128xbf16>
    %25 = arith.select %22, %23, %3 : vector<4x128xi1>, vector<4x128xbf16>
    %c0_9 = arith.constant 0 : index
    %c0_10 = arith.constant 0 : index
    %26 = vector.load %arg7[%c0_9, %c0_10] : memref<16x128xbf16, #tpu.memory_space<vmem>>, vector<4x128xbf16>
    tpu.vector_store %arg7[%c0_9, %c0_10], %1 {strides = array<i32>} : memref<16x128xbf16, #tpu.memory_space<vmem>>, vector<4x128xbf16>,
    %c8 = arith.constant 8 : index
    %c0_11 = arith.constant 0 : index
    %27 = vector.load %arg7[%c8, %c0_11] : memref<16x128xbf16, #tpu.memory_space<vmem>>, vector<4x128xbf16>
    tpu.vector_store %arg7[%c8, %c0_11], %3 {strides = array<i32>} : memref<16x128xbf16, #tpu.memory_space<vmem>>, vector<4x128xbf16>,
    %28 = vector.extract_strided_slice %24 {offsets = [0, 1], sizes = [4, 127], strides = [1, 1]} : vector<4x128xbf16> to vector<4x127xbf16>
    %c4 = arith.constant 4 : index
    %c0_12 = arith.constant 0 : index
    %29 = vector.load %arg7[%c4, %c0_12] : memref<16x128xbf16, #tpu.memory_space<vmem>>, vector<4x127xbf16>
    tpu.vector_store %arg7[%c4, %c0_12], %28 {strides = array<i32>} : memref<16x128xbf16, #tpu.memory_space<vmem>>, vector<4x127xbf16>,
    %30 = vector.extract_strided_slice %25 {offsets = [0, 1], sizes = [4, 127], strides = [1, 1]} : vector<4x128xbf16> to vector<4x127xbf16>
    %c12 = arith.constant 12 : index
    %c0_13 = arith.constant 0 : index
    %31 = vector.load %arg7[%c12, %c0_13] : memref<16x128xbf16, #tpu.memory_space<vmem>>, vector<4x127xbf16>
    tpu.vector_store %arg7[%c12, %c0_13], %30 {strides = array<i32>} : memref<16x128xbf16, #tpu.memory_space<vmem>>, vector<4x127xbf16>,
    %32 = vector.extract_strided_slice %23 {offsets = [0, 0], sizes = [4, 1], strides = [1, 1]} : vector<4x128xbf16> to vector<4x1xbf16>
    %c4_14 = arith.constant 4 : index
    %c127 = arith.constant 127 : index
    %33 = vector.load %arg7[%c4_14, %c127] : memref<16x128xbf16, #tpu.memory_space<vmem>>, vector<4x1xbf16>
    tpu.vector_store %arg7[%c4_14, %c127], %32 {strides = array<i32>} : memref<16x128xbf16, #tpu.memory_space<vmem>>, vector<4x1xbf16>,
    %34 = vector.extract_strided_slice %23 {offsets = [0, 0], sizes = [4, 1], strides = [1, 1]} : vector<4x128xbf16> to vector<4x1xbf16>
    %c12_15 = arith.constant 12 : index
    %c127_16 = arith.constant 127 : index
    %35 = vector.load %arg7[%c12_15, %c127_16] : memref<16x128xbf16, #tpu.memory_space<vmem>>, vector<4x1xbf16>
    tpu.vector_store %arg7[%c12_15, %c127_16], %34 {strides = array<i32>} : memref<16x128xbf16, #tpu.memory_space<vmem>>, vector<4x1xbf16>,
    %c0_17 = arith.constant 0 : index
    %c0_18 = arith.constant 0 : index
    %36 = vector.load %arg4[%c0_17, %c0_18] : memref<32x16xbf16, #tpu.memory_space<vmem>>, vector<32x16xbf16>
    %c0_19 = arith.constant 0 : index
    %c0_20 = arith.constant 0 : index
    %37 = vector.load %arg7[%c0_19, %c0_20] : memref<16x128xbf16, #tpu.memory_space<vmem>>, vector<16x128xbf16>
    %cst_21 = arith.constant dense<0.000000e+00> : vector<32x128xf32>
    %38 = tpu.matmul %36, %37, %cst_21 {dimension_numbers = #tpu.dot_dimension_numbers<[1], [0], [0], [1], [0, 0, 1, 1], [], []>} : vector<32x16xbf16>, vector<16x128xbf16>, vector<32x128xf32> -> vector<32x128xf32>
    %c0_22 = arith.constant 0 : index
    %c0_23 = arith.constant 0 : index
    %39 = vector.load %arg5[%c0_22, %c0_23] : memref<32x1xf32, #tpu.memory_space<vmem>>, vector<32x1xf32>
    %40 = vector.broadcast %39 : vector<32x1xf32> to vector<32x128xf32>
    %41 = arith.addf %38, %40 : vector<32x128xf32>
    %cst_24 = arith.constant 0.000000e+00 : f32
    %42 = vector.broadcast %cst_24 : f32 to vector<32x128xf32>
    %43 = arith.maximumf %41, %42 : vector<32x128xf32>
    %c0_25 = arith.constant 0 : index
    %c0_26 = arith.constant 0 : index
    %c0_27 = arith.constant 0 : index
    %44 = vector.load %arg6[%c0_25, %c0_26, %c0_27] : memref<1x32x128xf32, #tpu.memory_space<vmem>>, vector<1x32x128xf32>
    %45 = vector.shape_cast %44 : vector<1x32x128xf32> to vector<32x128xf32>
    %46 = vector.shape_cast %43 : vector<32x128xf32> to vector<1x32x128xf32>
    tpu.vector_store %arg6[%c0_25, %c0_26, %c0_27], %46 {strides = array<i32>} : memref<1x32x128xf32, #tpu.memory_space<vmem>>, vector<1x32x128xf32>,
    return
  }
  func.func @transform_0(%arg0: i32, %arg1: i32) -> (i32, i32, i32) {
    %c0_i32 = arith.constant 0 : i32
    %c0_i32_0 = arith.constant 0 : i32
    return %arg0, %c0_i32, %arg1 : i32, i32, i32
  }
  func.func @transform_1(%arg0: i32, %arg1: i32) -> (i32, i32, i32) {
    %c0_i32 = arith.constant 0 : i32
    %c0_i32_0 = arith.constant 0 : i32
    return %arg0, %c0_i32, %arg1 : i32, i32, i32
  }
  func.func @transform_2(%arg0: i32, %arg1: i32) -> (i32, i32) {
    %c0_i32 = arith.constant 0 : i32
    %c0_i32_0 = arith.constant 0 : i32
    %c0_i32_1 = arith.constant 0 : i32
    return %c0_i32, %c0_i32_0 : i32, i32
  }
  func.func @transform_3(%arg0: i32, %arg1: i32) -> (i32, i32) {
    %c0_i32 = arith.constant 0 : i32
    %c0_i32_0 = arith.constant 0 : i32
    %c0_i32_1 = arith.constant 0 : i32
    return %c0_i32, %c0_i32_0 : i32, i32
  }
  func.func @transform_4(%arg0: i32, %arg1: i32) -> (i32, i32, i32) {
    %c0_i32 = arith.constant 0 : i32
    %c0_i32_0 = arith.constant 0 : i32
    return %arg0, %c0_i32, %arg1 : i32, i32, i32
  }
}

</mosaic_0001>

<bundles_post_ra>
// kernel: tpu_custom_call.1
= control target key start
LH: loop header
LB: loop body
LE: loop exit
PB: predicated region body
PF: predicated region fallthrough
CT: control target
= control target key end

     0   :  { %9 = vsyncpa [#allocation4], 0  ;;  %s938_s0 = inlined_call_operand.vmem [shape: bf16[2,4,256], index: 0, kind: input, shape index: {}]   ;;  %s939_s1 = inlined_call_operand.vmem [shape: bf16[2,4,256], index: 1, kind: input, shape index: {}]   ;;  %s940_s2 = inlined_call_operand.vmem [shape: bf16[32,16], index: 2, kind: input, shape index: {}]   ;;  %s941_s3 = inlined_call_operand.vmem [shape: f32[32,1], index: 3, kind: input, shape index: {}]   ;;  %s942_s4 = inlined_call_operand.hbm [shape: f32[2,32,256], index: 4, kind: output, shape index: {}]  }
   0x1   :  { %11 = vsyncpa [#allocation4 + $0x1], 0  ;;  %s775_s15 = smov 0   ;;  %s777_s16 = smov 0  }
   0x2   :  { %s779_s17 = smov 0   ;;  %s781_s18 = smov 0  }
   0x3   :  { %s783_s19 = smov 0   ;;  %s785_s20 = smov 0  }
   0x4   :  { %s787_s21 = smov 0   ;;  %s789_s22 = smov 0  }
   0x5 LB: > { %s538_s23 = sadd.s32 4294967295, %s741_s22   ;;  %s539_s24 = sadd.s32 4294967294, %s741_s22   ;;  %s741_s22 = sphi %s789_s22, %s17_s22   ;;  %s737_s21 = sphi %s787_s21, %s951_s21   ;;  %s733_s20 = sphi %s785_s20, %s950_s20   ;;  %s729_s19 = sphi %s783_s19, %s949_s19   ;;  %s725_s18 = sphi %s781_s18, %s948_s18   ;;  %s721_s17 = sphi %s779_s17, %s947_s17   ;;  %s717_s16 = sphi %s777_s16, %s946_s16   ;;  %s713_s15 = sphi %s775_s15, %s945_s15  }
   0x6   : > { %s26_s25 = sadd.s32 1, %s733_s20  ;;  %s29_s26 = sadd.s32 1, %s737_s21 }
   0x7   : > { %p27_p0 = scmp.ge.s32.totalorder %s26_s25, 2  ;;  %p146_p1 = scmp.ne.s32.totalorder %s721_s17, %s717_s16 }
   0x8   : > { %p147_p2 = scmp.eq.s32.totalorder %s538_s23, 3  ;;  %p152_p5 = scmp.ne.s32.totalorder %s717_s16, %s713_s15 }
   0x9   : > { %s953_s25 = smov (%p27_p0, %s26_s25), 0  ;;  %s955_s26 = smov (!%p27_p0, %s29_s26), %s737_s21 }
   0xa   : > { %s132_s27 = ssub.s32 %s733_s20, %s953_s25  ;;  %p826_p3 = por %p147_p2, %p146_p1 }
   0xb   : > { %p31_p4 = scmp.ge.s32.totalorder %s955_s26, 2  ;;  %p153_p6 = scmp.eq.s32.totalorder %s539_s24, 3 }
   0xc   : > { %p542_p7 = scmp.ge.s32.totalorder %s741_s22, 1  ;;  %p199_p9 = scmp.lt.s32.totalorder %s741_s22, 5 }
   0xd   : > { %s957_s26 = smov (%p31_p4, %s955_s26), 0  ;;  %p835_p8 = por %p153_p6, %p152_p5 }
   0xe   : > { %s131_s30 = ssub.s32 %s737_s21, %s957_s26  ;;  %s136_s5 = sadd.s32 1, %s721_s17 }
   0xf   : > { %s133_s6 = sor.u32 %s132_s27, %s131_s30  ;;  %p200_p10 = pnand %p542_p7, %p199_p9 }
  0x10   : > { %p134_p11 = scmp.eq.s32.totalorder %s133_s6, 0  ;;  %p236_p12 = scmp.lt.s32.totalorder (!%p200_p10), %s729_s19, 1  ;;  %v256_v0 = vlaneseq (!%p200_p10)  ;;  %v743_v1 = vmov (!%p200_p10), 1983009808   ;;  %v744_v3 = vmov (!%p200_p10), 0   ;;  %v645_v22 = vld [vmem:[%s940_s2] sm:$0xff] (!%p200_p10)  }
  0x11   : > { %203 = sbr.rel (%p200_p10) target bundleno = 403 (0x193), region = 36  ;;  %p238_p13 = scmp.lt.s32.totalorder (!%p200_p10), %s725_s18, 1  ;;  %v279_v2 = vunpack.c.l.s4 (!%p200_p10), %v743_v1  ;;  %643 = vset.pattern.permute.xlu1 (!%p200_p10), %v744_v3  ;;  %644 = vset.pattern.permute.xlu0 (!%p200_p10), %v744_v3  ;;  %vm360_vm2 = vcmask (!%p200_p10), 130048   ;;  %v326_v23 = vld [vmem:[%s941_s3] sm:$0xff] (!%p200_p10)  ;;  %v328_v24 = vld [vmem:[%s941_s3 + $0x10] sm:$0xff] (!%p200_p10)  ;;  %v327_v25 = vld [vmem:[%s941_s3 + $0x8] sm:$0xff] (!%p200_p10) }
  0x12   : > { %s844_s7 = scalar_select %p134_p11, %s721_s17, %s136_s5  }
  0x13   : > { %v257_v4 = vand.u32 (!%p200_p10), 127, %v256_v0  ;;  %v280_v5 = vunpack.c.0.s8 (!%p200_p10), %v279_v2  ;;  %v282_v6 = vshrl.u32 (!%p200_p10), %v256_v0, 7  ;;  %s745_s5 = smov (!%p200_p10), 127   ;;  %562 = vmatprep.mubr.msk.bf16.mxu0 (!%p200_p10), %vm360_vm2, %v645_v22  ;;  %332 = vperm.xlu1 (!%p200_p10), %643, %v326_v23   ;;  %v329_v26 = vld [vmem:[%s941_s3 + $0x18] sm:$0xff] (!%p200_p10)  ;;  %vm300_vm3 = vcmask (!%p200_p10), 1035266   ;;  %v646_v30 = vld [vmem:[%s940_s2 + $0x8] sm:$0xff] (!%p200_p10)  }
  0x14   : > { %vm317_vm4 = vcmask (!%p200_p10), 1044474   ;;  %vm315_vm5 = vcmask (!%p200_p10), 1039366   ;;  %vm319_vm6 = vcmask (!%p200_p10), 1048574   ;;  %s553_s6 = sshll.u32 (!%p200_p10), %s729_s19, 3  ;;  %s746_s24 = smov (!%p200_p10), [#allocation3]  }
  0x15   : > { %v262_v7 = vand.u32 (!%p200_p10), 15, %v257_v4  ;;  %v283_v9 = vsub.s32 (!%p200_p10), %v280_v5, %v282_v6  ;;  %s651_s27 = sshll.u32 (!%p200_p10), %s746_s24, 4  ;;  %s652_s27 = int_to_ptr.vmem [resolvable:$false] %s651_s27 }
  0x17   : > { %vm270_vm0 = vcmp.eq.s32.totalorder (!%p200_p10), %v262_v7, 0  ;;  %337 = vperm.xlu1 (!%p200_p10), %643, %v327_v25  }
  0x18   : > { %s237_s8 = scalar_select %p236_p12, %s729_s19, 1  ;;  %v271_v8 = vsel %vm270_vm0, 1, %v744_v3 }
  0x19   : > { %s239_s9 = scalar_select %p238_p13, %s725_s18, 1  ;;  %v272_v12 = vpack.c.b16 %v271_v8, %v271_v8 }
  0x1a   : > { %s544_s10 = sshll.u32 %s237_s8, 1 }
  0x1b   : > { %s241_s11 = sadd.s32 %s544_s10, %s239_s9  ;;  %vm273_vm1 = vcmp.ne.s16.totalorder %v272_v12, 0  ;;  %347 = vperm.xlu1 %643, %v329_v26   ;;  %s436_s9 = sadd.s32 %s725_s18, %s553_s6 }
  0x1c   : > { %s545_s12 = sshll.u32 %s241_s11, 1 }
  0x1d   : > { %s243_s23 = scalar_lea.vmem %s938_s0, %s545_s12  ;;  %s251_s30 = scalar_lea.vmem %s939_s1, %s545_s12 }
  0x1e   : > { %v254_v10 = vld [vmem:[%s243_s23] sm:$0x3]  ;;  %s554_s12 = sshll.u32 %s436_s9, 7 }
  0x1f   : > { %v255_v11 = vld [vmem:[%s251_s30] sm:$0x3]  ;;  %276 = vst [vmem:[#allocation2] sm:$0x3] %v254_v10  ;;  %v274_v14 = vsel %vm273_vm1, 0, %v254_v10  ;;  %s884_s13 = scalar_lea.hbm %s942_s4, %s554_s12  ;;  %s653_s30 = scalar_lea.vmem %s652_s27, 1024 }
  0x20   : > { %v284_v13 = vrot.slane %v255_v11, %v283_v9  ;;  %v275_v15 = vsel %vm273_vm1, 0, %v255_v11  ;;  %v289_v17 = vcombine.low %v274_v14, %v274_v14 }
  0x21   : > { %v303_v18 = vcombine.low %v275_v15, %v275_v15 }
  0x22   : > { %v285_v16 = vcombine.low %v284_v13, %v284_v13  ;;  %v296_v19 = vrot.slane %v289_v17, %v283_v9 }
  0x23   : > { %v310_v20 = vrot.slane %v303_v18, %v283_v9 }
  0x24   : > { %287 = vst [vmem:[#allocation2] sm:$0x30] %v285_v16  ;;  %297 = vrot.lane.b32.xlu0 %v296_v19, %s745_s5 }
  0x25   : > { %v311_v21 = vcombine.low %v310_v20, %v310_v20 }
  0x28   : > { %312 = vrot.lane.b32.xlu0 %v311_v21, %s745_s5  ;;  %s233_s5 = sand.u32 1, %s717_s16  }
  0x29   : > { %s543_s8 = sshll.u32 %s233_s5, 5  ;;  %s886_s14 = scalar_lea.sflag [#allocation4], %s233_s5 }
  0x2a   : > { %s235_s10 = scalar_lea.vmem [#allocation3], %s543_s8 }
  0x2b   : > { %s439_s11 = sshll.u32 %s235_s10, 4  ;;  %s879_s11 = int_to_ptr.vmem [resolvable:$true] %s439_s11 }
  0x2c   : > { %342 = vperm.xlu0 %644, %v328_v24   ;;  %s647_s23 = scalar_lea.vmem %s879_s11, 512  ;;  %p654_p4 = scmp.lt.s32.totalorder %s879_s11, %s652_s27 }
  0x2d   : > { %p648_p0 = scmp.ne.s32.totalorder %s879_s11, %s647_s23  ;;  %p655_p5 = scmp.lt.s32.totalorder %s653_s30, %s647_s23 }
  0x2f   : > { %p649_p1 = pnand %p648_p0, %p826_p3  ;;  %p656_p6 = por %p655_p5, %p654_p4 }
  0x31   : > { %p650_p2 = pneg %p649_p1 }
  0x33   : > { %p657_p7 = pnand %p656_p6, %p650_p2 }
  0x92   : > { %v333_v31 = vpop.permute.xlu1 %332 }
  0x96   : > { %v298_v27 = vpop.permute.xlu0 %297  ;;  %v338_v32 = vpop.permute.xlu1 %337 }
  0x97   : > { %301 = vst.msk [vmem:[#allocation2] sm:$0xc] %vm300_vm3, %v298_v27 }
  0x98   : > { %318 = vst.msk [vmem:[#allocation2] sm:$0xc] %vm317_vm4, %v744_v3 }
  0x9a   : > { %v313_v28 = vpop.permute.xlu0 %312  ;;  %v348_v37 = vpop.permute.xlu1 %347 }
  0x9b   : > { %316 = vst.msk [vmem:[#allocation2] sm:$0xc0] %vm315_vm5, %v313_v28 }
  0x9c   : > { %320 = vst.msk [vmem:[#allocation2] sm:$0xc0] %vm319_vm6, %v744_v3 }
  0xa3   : > { %v325_v29 = vld [vmem:[#allocation2] sm:$0xff] }
  0xa4   : > { %560 = vmatprep.subr.bf16.mxu0 %v325_v29 }
  0xa5   : > { %561 = vmatpush3.bf16.msra.mxu0 %v325_v29 }
  0xa8   : > { %563 = vmatmul.mubr.msk.bf16.vlgmr.msra.gmra.mrb[0].mxu0 %vm360_vm2, %v646_v30 }
  0xab   : > { %v343_v33 = vpop.permute.xlu0 %342 }
 0x17b   : > { %v564_v34 = vpop.f32.mrb[0].mxu0 }
 0x17c   : > { %v410_v35 = vadd.f32 %v564_v34, %v343_v33  ;;  %v401_v36 = vpop.f32.mrb[1].mxu0 }
 0x17d   : > { %v402_v38 = vadd.f32 %v401_v36, %v333_v31  ;;  %v565_v39 = vpop.f32.mrb[2].mxu0 }
 0x17e   : > { %v418_v40 = vmax.f32 %v410_v35, 0.0  ;;  %v413_v41 = vadd.f32 %v565_v39, %v348_v37  ;;  %v404_v42 = vpop.f32.mrb[3].mxu0 }
 0x17f   : > { %v416_v43 = vmax.f32 %v402_v38, 0.0  ;;  %v405_v44 = vadd.f32 %v404_v42, %v338_v32 }
 0x180   : > { %422 = vst [vmem:[%s235_s10 + $0x10] sm:$0xff] %v418_v40  ;;  %v419_v45 = vmax.f32 %v413_v41, 0.0 }
 0x181   : > { %420 = vst [vmem:[%s235_s10] sm:$0xff] %v416_v43  ;;  %v417_v46 = vmax.f32 %v405_v44, 0.0 }
 0x182   : > { %423 = vst [vmem:[%s235_s10 + $0x18] sm:$0xff] %v419_v45 }
 0x183   : > { %421 = vst [vmem:[%s235_s10 + $0x8] sm:$0xff] %v417_v46 }
 0x184   : > { %660 = shalt.err (!%p657_p7)
}
 0x185   : > { %s661_s5 = scalar_lea.hbm %s884_s13, 512  ;;  %s665_s9 = scalar_lea.hbm %s942_s4, 2048 }
 0x186   : > { %p662_p9 = scmp.ne.s32.totalorder %s884_s13, %s661_s5  ;;  %p666_p12 = scmp.lt.u32.totalorder %s884_s13, %s942_s4 }
 0x187   : > { %p667_p13 = scmp.lt.u32.totalorder %s665_s9, %s661_s5  ;;  %p669_p1 = scmp.lt.u32.totalorder %s661_s5, %s884_s13 }
 0x188   : > { %p663_p10 = pnand %p662_p9, %p826_p3 }
 0x189   : > { %p668_p0 = por %p667_p13, %p666_p12 }
 0x18a   : > { %p664_p11 = pneg %p663_p10 }
 0x18b   : > { %p670_p2 = por %p669_p1, %p668_p0 }
 0x18d   : > { %p671_p4 = pnand %p670_p2, %p664_p11 }
 0x18f   : > { %674 = shalt.err (!%p671_p4)
}
 0x190   : > { %s747_s18 = smov 128   ;;  %s748_s19 = smov 256  }
 0x191   : > { %s749_s23 = smov 8  }
 0x192   : > { %566 = dma.vmem_to_hbm [thread:$0]  (%p826_p3), %s879_s11, 512, %s884_s13, %s886_s14, %s747_s18, %s748_s19, %s749_s23  }
 0x193 PF: > { %p572_p5 = scmp.ge.s32.totalorder %s741_s22, 2  ;;  %s454_s24 = sand.u32 1, %s713_s15  }
 0x194   : > { %s455_s27 = scalar_lea.sflag [#allocation4], %s454_s24 }
 0x195   : > { %p569_p6 = pnand %p572_p5, %p835_p8 }
 0x197   : > { %708 = dma.done.wait (!%p569_p6), %s455_s27, 512  }
 0x198   : > { %710 = vsyncadd (!%p569_p6), %s455_s27, 4294966784  ;;  %s17_s22 = sadd.s32 1, %s741_s22   ;;  %s945_s15 = smov %s717_s16 }
 0x199   : > { %p14_p7 = scmp.ge.s32.totalorder %s17_s22, 6   ;;  %s946_s16 = smov %s721_s17 }
 0x19a   : > { %s947_s17 = smov %s844_s7  ;;  %s948_s18 = smov %s733_s20 }
 0x19b   : > { %s949_s19 = smov %s737_s21  ;;  %s950_s20 = smov %s953_s25 }
 0x19c   : > { %s951_s21 = smov %s957_s26  ;;  %16 = sbr.rel (!%p14_p7) target bundleno = 5 (0x5), region = 74 }
 0x1a3   :  { %460 = vsyncpa [#allocation4], 1 }
 0x1a4   :  { %462 = vsyncpa [#allocation4 + $0x1], 1 }

</bundles_post_ra>
